<compile_context>
chip_gen: v6e
topology: v6e:2x2x1
jax: 0.10.0
libtpu: 0.0.40
codegen_flags: <defaults>
</compile_context>

<pallas_src>
import functools

import jax
import jax.numpy as jnp
from jax.experimental import pallas as pl
from jax.experimental.pallas import tpu as pltpu

BN_EPS = 1e-5
LANE = 128
# Target rows per grid step: ~256 fills a v6e/v7x MXU pass; v5e saturates at ~128 but
# 256 costs little there. (Sweep 128-1024 if this ever shows up in a profile.)
TARGET_ROWS = 256


def predicate_encoder_kernel(x_ref, w_ref, gb_ref, o_ref, *, num_sets, set_size, in_dim):
    # x_ref : (num_sets*set_size, in_dim)   Bt predicate sets, flattened rows
    # w_ref : (3, 128, 128) zero-padded, pre-transposed Linear weights (in, out)
    # gb_ref: (6, 128) rows 0..2 = gamma_1..3 (zero-padded), rows 3..5 = beta_1..3
    # o_ref : (num_sets*set_size, 128) lane-dense, zero-padded output
    rows = num_sets * set_size
    x = x_ref[...]
    if x.dtype != jnp.float32:
        x = x.astype(jnp.float32)
    inv_n = 1.0 / set_size

    def linear_bn_relu(h, w, gamma, beta):
        # Linear bias omitted: training-mode BN subtracts the per-set batch mean, which
        # cancels the bias exactly (mean(hW + b) = mean(hW) + b).
        z = jnp.dot(h, w, preferred_element_type=jnp.float32)           # (rows, 128)
        z3 = z.reshape(num_sets, set_size, LANE)                         # per-set stat groups
        mean = jnp.sum(z3, axis=1, keepdims=True) * inv_n                # (Bt, 1, 128)
        c = z3 - mean
        var = jnp.sum(c * c, axis=1, keepdims=True) * inv_n              # centered (two-pass) var
        # Affine-folded BN: only one mul + one add at full (rows, 128) width.
        scale = gamma * jax.lax.rsqrt(var + BN_EPS)                      # (Bt, 1, 128)
        shift = beta - mean * scale                                      # (Bt, 1, 128)
        return jnp.maximum(z3 * scale + shift, 0.0).reshape(rows, LANE)

    h = linear_bn_relu(x, w_ref[0, :in_dim, :], gb_ref[0:1, :], gb_ref[3:4, :])
    h = linear_bn_relu(h, w_ref[1],             gb_ref[1:2, :], gb_ref[4:5, :])
    h = linear_bn_relu(h, w_ref[2],             gb_ref[2:3, :], gb_ref[5:6, :])
    o_ref[...] = h.astype(o_ref.dtype)


def prepare_params(params):
    """One-time packing of the 3 layers into two padded device buffers (hoisted out of
    the hot path per perf review). Padding is all-zero so padded lanes stay exactly zero."""
    ws = []
    for i in range(1, 4):
        w = params[f"w{i}"]  # (in, out)
        ws.append(jnp.pad(w, ((0, LANE - w.shape[0]), (0, LANE - w.shape[1]))))
    w_packed = jnp.stack(ws)  # (3, 128, 128)

    def pad_row(r):  # (1, F) -> (1, 128), zero padded
        return jnp.pad(r, ((0, 0), (0, LANE - r.shape[1])))

    gb_packed = jnp.concatenate(
        [pad_row(params[f"g{i}"]) for i in range(1, 4)]
        + [pad_row(params[f"be{i}"]) for i in range(1, 4)],
        axis=0,
    )  # (6, 128)
    out_dim = params["w3"].shape[1]
    in_dim = params["w1"].shape[0]
    return w_packed, gb_packed, out_dim, in_dim


def _choose_block_sets(B, N, target_rows=TARGET_ROWS):
    """Largest divisor of B whose per-step row count stays within ~target_rows,
    keeping the second-minor block dim sublane-aligned when the grid has >1 step."""
    best = 1
    for bt in range(1, B + 1):
        if B % bt:
            continue
        if bt != B and (bt * N) % 8:
            continue
        if bt * N <= max(target_rows, N):
            best = bt
    return best


@functools.partial(jax.jit, static_argnames=("out_dim", "block_sets"))
def _predicate_encoder_call(x, w_packed, gb_packed, *, out_dim, block_sets):
    B, N, D = x.shape
    rows = block_sets * N
    x2d = x.reshape(B * N, D)  # merge leading dims (free: last dim untouched)

    kernel = functools.partial(
        predicate_encoder_kernel, num_sets=block_sets, set_size=N, in_dim=D)

    out = pl.pallas_call(
        kernel,
        out_shape=jax.ShapeDtypeStruct((B * N, LANE), jnp.float32),
        grid=(B // block_sets,),
        in_specs=[
            # Bt predicate sets (full BN stat groups) per grid step.
            pl.BlockSpec((rows, D), lambda g: (g, 0)),
            # Parameters: constant block index -> DMA'd once, reused across the grid.
            pl.BlockSpec((3, LANE, LANE), lambda g: (0, 0, 0)),
            pl.BlockSpec((6, LANE), lambda g: (0, 0)),
        ],
        out_specs=pl.BlockSpec((rows, LANE), lambda g: (g, 0)),
        compiler_params=pltpu.CompilerParams(
            dimension_semantics=("parallel",),  # shards grid steps across TCs on v7x (if >1 step)
        ),
    )(x2d, w_packed, gb_packed)

    # TODO(synk): if downstream can consume the padded (B*N, 128) slab directly, return
    # `out` as-is to skip this slice copy and the 4x padded HBM writeback at large B*N.
    return out[:, :out_dim].reshape(B, N, out_dim)


def predicate_encoder(x, packed):
    """x: (B, N, D) or (N, D) float32; packed = prepare_params(params).
    Each (N, D) slab is one BatchNorm stat group (== one PyTorch forward() call)."""
    w_packed, gb_packed, out_dim, in_dim = packed
    squeeze = x.ndim == 2
    if squeeze:
        x = x[None]
    B, N, D = x.shape
    assert D == in_dim, (D, in_dim)
    assert D <= LANE and out_dim <= LANE
    bt = _choose_block_sets(B, N)
    out = _predicate_encoder_call(x, w_packed, gb_packed, out_dim=out_dim, block_sets=bt)
    return out[0] if squeeze else out


def init_params(key, input_dim, hidden_dims=(64, 64, 32)):
    """Deterministic synthetic parameters. Linear weights stored as (in, out)."""
    dims = (input_dim,) + tuple(hidden_dims)
    params = {}
    keys = jax.random.split(key, 6)
    for i in range(3):
        fan_in, fan_out = dims[i], dims[i + 1]
        bound = 1.0 / jnp.sqrt(fan_in)
        params[f"w{i+1}"] = jax.random.uniform(
            keys[2 * i], (fan_in, fan_out), jnp.float32, -bound, bound)
        params[f"b{i+1}"] = jax.random.uniform(
            keys[2 * i + 1], (1, fan_out), jnp.float32, -bound, bound)
        # BatchNorm affine params (PyTorch default init: gamma=1, beta=0)
        params[f"g{i+1}"] = jnp.ones((1, fan_out), jnp.float32)
        params[f"be{i+1}"] = jnp.zeros((1, fan_out), jnp.float32)
    return params


def predicate_encoder_ref(x, params):
    """Pure-JAX reference for one (N, D) set: exact PyTorch training-mode forward
    (including the Linear biases that the kernel drops via BN-mean cancellation)."""
    h = x
    for i in range(1, 4):
        h = h @ params[f"w{i}"] + params[f"b{i}"]
        mean = jnp.mean(h, axis=0, keepdims=True)
        var = jnp.mean((h - mean) ** 2, axis=0, keepdims=True)
        h = (h - mean) / jnp.sqrt(var + BN_EPS) * params[f"g{i}"] + params[f"be{i}"]
        h = jnp.maximum(h, 0.0)
    return h


if __name__ == "__main__":
    key = jax.random.PRNGKey(0)
    k_x, k_p = jax.random.split(key)

    # B predicate sets, each with N=8 predicates of 32-dim (col, op, val) embeddings.
    B, N, INPUT_DIM = 4, 8, 32
    x = jax.random.normal(k_x, (B, N, INPUT_DIM), jnp.float32)
    params = init_params(k_p, INPUT_DIM, hidden_dims=(64, 64, 32))

    packed = prepare_params(params)          # hoisted one-time packing (perf review)
    out = predicate_encoder(x, packed)
    out = jax.block_until_ready(out)

    ref = jax.vmap(lambda xb: predicate_encoder_ref(xb, params))(x)
    assert out.shape == (B, N, 32), out.shape
    err = float(jnp.max(jnp.abs(out - ref)))
    assert jnp.allclose(out, ref, atol=1e-3, rtol=1e-3), f"mismatch vs reference: {err}"

    print("KERNEL_OK")
</pallas_src>

<mosaic_0001>
module attributes {stable_mosaic.version = 11 : i64} {
  func.func @predicate_encoder_kernel(%arg0: i32, %arg1: memref<32x32xf32, #tpu.memory_space<vmem>>, %arg2: memref<3x128x128xf32, #tpu.memory_space<vmem>>, %arg3: memref<6x128xf32, #tpu.memory_space<vmem>>, %arg4: memref<32x128xf32, #tpu.memory_space<vmem>>) attributes {dimension_semantics = [#tpu.dimension_semantics<parallel>], iteration_bounds = array<i64: 1>, scalar_prefetch = 0 : i64, scratch_operands = 0 : i64, tpu.core_type = #tpu.core_type<tc>, window_params = [{transform_indices = @transform_0, window_bounds = array<i64: 32, 32>}, {pipeline_mode = #tpu.pipeline_mode<synchronous>, transform_indices = @transform_1, window_bounds = array<i64: 3, 128, 128>}, {pipeline_mode = #tpu.pipeline_mode<synchronous>, transform_indices = @transform_2, window_bounds = array<i64: 6, 128>}, {transform_indices = @transform_3, window_bounds = array<i64: 32, 128>}]} {
    %c0 = arith.constant 0 : index
    %c0_0 = arith.constant 0 : index
    %0 = vector.load %arg1[%c0, %c0_0] : memref<32x32xf32, #tpu.memory_space<vmem>>, vector<32x32xf32>
    %c0_1 = arith.constant 0 : index
    %c0_2 = arith.constant 0 : index
    %c0_3 = arith.constant 0 : index
    %1 = vector.load %arg2[%c0_1, %c0_2, %c0_3] : memref<3x128x128xf32, #tpu.memory_space<vmem>>, vector<1x32x128xf32>
    %2 = vector.shape_cast %1 : vector<1x32x128xf32> to vector<32x128xf32>
    %c0_4 = arith.constant 0 : index
    %c0_5 = arith.constant 0 : index
    %3 = vector.load %arg3[%c0_4, %c0_5] : memref<6x128xf32, #tpu.memory_space<vmem>>, vector<1x128xf32>
    %c3 = arith.constant 3 : index
    %c0_6 = arith.constant 0 : index
    %4 = vector.load %arg3[%c3, %c0_6] : memref<6x128xf32, #tpu.memory_space<vmem>>, vector<1x128xf32>
    %cst = arith.constant dense<0.000000e+00> : vector<32x128xf32>
    %5 = tpu.matmul %0, %2, %cst {dimension_numbers = #tpu.dot_dimension_numbers<[1], [0], [0], [1], [0, 0, 1, 1], [], []>} : vector<32x32xf32>, vector<32x128xf32>, vector<32x128xf32> -> vector<32x128xf32>
    %6 = vector.shape_cast %5 : vector<32x128xf32> to vector<4x8x128xf32>
    %cst_7 = arith.constant dense<0.000000e+00> : vector<4x128xf32>
    %7 = vector.multi_reduction <add>, %6, %cst_7 [1] : vector<4x8x128xf32> to vector<4x128xf32>
    %8 = vector.shape_cast %7 : vector<4x128xf32> to vector<4x1x128xf32>
    %cst_8 = arith.constant 1.250000e-01 : f32
    %9 = vector.broadcast %cst_8 : f32 to vector<4x1x128xf32>
    %10 = arith.mulf %8, %9 : vector<4x1x128xf32>
    %11 = vector.broadcast %10 : vector<4x1x128xf32> to vector<4x8x128xf32>
    %12 = arith.subf %6, %11 : vector<4x8x128xf32>
    %13 = arith.mulf %12, %12 : vector<4x8x128xf32>
    %cst_9 = arith.constant dense<0.000000e+00> : vector<4x128xf32>
    %14 = vector.multi_reduction <add>, %13, %cst_9 [1] : vector<4x8x128xf32> to vector<4x128xf32>
    %15 = vector.shape_cast %14 : vector<4x128xf32> to vector<4x1x128xf32>
    %cst_10 = arith.constant 1.250000e-01 : f32
    %16 = vector.broadcast %cst_10 : f32 to vector<4x1x128xf32>
    %17 = arith.mulf %15, %16 : vector<4x1x128xf32>
    %cst_11 = arith.constant 9.99999974E-6 : f32
    %18 = vector.broadcast %cst_11 : f32 to vector<4x1x128xf32>
    %19 = arith.addf %17, %18 : vector<4x1x128xf32>
    %20 = math.rsqrt %19 : vector<4x1x128xf32>
    %21 = vector.shape_cast %3 : vector<1x128xf32> to vector<1x1x128xf32>
    %22 = vector.broadcast %21 : vector<1x1x128xf32> to vector<4x1x128xf32>
    %23 = arith.mulf %22, %20 : vector<4x1x128xf32>
    %24 = arith.mulf %10, %23 : vector<4x1x128xf32>
    %25 = vector.shape_cast %4 : vector<1x128xf32> to vector<1x1x128xf32>
    %26 = vector.broadcast %25 : vector<1x1x128xf32> to vector<4x1x128xf32>
    %27 = arith.subf %26, %24 : vector<4x1x128xf32>
    %28 = vector.broadcast %23 : vector<4x1x128xf32> to vector<4x8x128xf32>
    %29 = arith.mulf %6, %28 : vector<4x8x128xf32>
    %30 = vector.broadcast %27 : vector<4x1x128xf32> to vector<4x8x128xf32>
    %31 = arith.addf %29, %30 : vector<4x8x128xf32>
    %cst_12 = arith.constant 0.000000e+00 : f32
    %32 = vector.broadcast %cst_12 : f32 to vector<4x8x128xf32>
    %33 = arith.maximumf %31, %32 : vector<4x8x128xf32>
    %34 = vector.shape_cast %33 : vector<4x8x128xf32> to vector<32x128xf32>
    %c1 = arith.constant 1 : index
    %c0_13 = arith.constant 0 : index
    %c0_14 = arith.constant 0 : index
    %35 = vector.load %arg2[%c1, %c0_13, %c0_14] : memref<3x128x128xf32, #tpu.memory_space<vmem>>, vector<1x128x128xf32>
    %36 = vector.shape_cast %35 : vector<1x128x128xf32> to vector<128x128xf32>
    %c1_15 = arith.constant 1 : index
    %c0_16 = arith.constant 0 : index
    %37 = vector.load %arg3[%c1_15, %c0_16] : memref<6x128xf32, #tpu.memory_space<vmem>>, vector<1x128xf32>
    %c4 = arith.constant 4 : index
    %c0_17 = arith.constant 0 : index
    %38 = vector.load %arg3[%c4, %c0_17] : memref<6x128xf32, #tpu.memory_space<vmem>>, vector<1x128xf32>
    %cst_18 = arith.constant dense<0.000000e+00> : vector<32x128xf32>
    %39 = tpu.matmul %34, %36, %cst_18 {dimension_numbers = #tpu.dot_dimension_numbers<[1], [0], [0], [1], [0, 0, 1, 1], [], []>} : vector<32x128xf32>, vector<128x128xf32>, vector<32x128xf32> -> vector<32x128xf32>
    %40 = vector.shape_cast %39 : vector<32x128xf32> to vector<4x8x128xf32>
    %cst_19 = arith.constant dense<0.000000e+00> : vector<4x128xf32>
    %41 = vector.multi_reduction <add>, %40, %cst_19 [1] : vector<4x8x128xf32> to vector<4x128xf32>
    %42 = vector.shape_cast %41 : vector<4x128xf32> to vector<4x1x128xf32>
    %cst_20 = arith.constant 1.250000e-01 : f32
    %43 = vector.broadcast %cst_20 : f32 to vector<4x1x128xf32>
    %44 = arith.mulf %42, %43 : vector<4x1x128xf32>
    %45 = vector.broadcast %44 : vector<4x1x128xf32> to vector<4x8x128xf32>
    %46 = arith.subf %40, %45 : vector<4x8x128xf32>
    %47 = arith.mulf %46, %46 : vector<4x8x128xf32>
    %cst_21 = arith.constant dense<0.000000e+00> : vector<4x128xf32>
    %48 = vector.multi_reduction <add>, %47, %cst_21 [1] : vector<4x8x128xf32> to vector<4x128xf32>
    %49 = vector.shape_cast %48 : vector<4x128xf32> to vector<4x1x128xf32>
    %cst_22 = arith.constant 1.250000e-01 : f32
    %50 = vector.broadcast %cst_22 : f32 to vector<4x1x128xf32>
    %51 = arith.mulf %49, %50 : vector<4x1x128xf32>
    %cst_23 = arith.constant 9.99999974E-6 : f32
    %52 = vector.broadcast %cst_23 : f32 to vector<4x1x128xf32>
    %53 = arith.addf %51, %52 : vector<4x1x128xf32>
    %54 = math.rsqrt %53 : vector<4x1x128xf32>
    %55 = vector.shape_cast %37 : vector<1x128xf32> to vector<1x1x128xf32>
    %56 = vector.broadcast %55 : vector<1x1x128xf32> to vector<4x1x128xf32>
    %57 = arith.mulf %56, %54 : vector<4x1x128xf32>
    %58 = arith.mulf %44, %57 : vector<4x1x128xf32>
    %59 = vector.shape_cast %38 : vector<1x128xf32> to vector<1x1x128xf32>
    %60 = vector.broadcast %59 : vector<1x1x128xf32> to vector<4x1x128xf32>
    %61 = arith.subf %60, %58 : vector<4x1x128xf32>
    %62 = vector.broadcast %57 : vector<4x1x128xf32> to vector<4x8x128xf32>
    %63 = arith.mulf %40, %62 : vector<4x8x128xf32>
    %64 = vector.broadcast %61 : vector<4x1x128xf32> to vector<4x8x128xf32>
    %65 = arith.addf %63, %64 : vector<4x8x128xf32>
    %cst_24 = arith.constant 0.000000e+00 : f32
    %66 = vector.broadcast %cst_24 : f32 to vector<4x8x128xf32>
    %67 = arith.maximumf %65, %66 : vector<4x8x128xf32>
    %68 = vector.shape_cast %67 : vector<4x8x128xf32> to vector<32x128xf32>
    %c2 = arith.constant 2 : index
    %c0_25 = arith.constant 0 : index
    %c0_26 = arith.constant 0 : index
    %69 = vector.load %arg2[%c2, %c0_25, %c0_26] : memref<3x128x128xf32, #tpu.memory_space<vmem>>, vector<1x128x128xf32>
    %70 = vector.shape_cast %69 : vector<1x128x128xf32> to vector<128x128xf32>
    %c2_27 = arith.constant 2 : index
    %c0_28 = arith.constant 0 : index
    %71 = vector.load %arg3[%c2_27, %c0_28] : memref<6x128xf32, #tpu.memory_space<vmem>>, vector<1x128xf32>
    %c5 = arith.constant 5 : index
    %c0_29 = arith.constant 0 : index
    %72 = vector.load %arg3[%c5, %c0_29] : memref<6x128xf32, #tpu.memory_space<vmem>>, vector<1x128xf32>
    %cst_30 = arith.constant dense<0.000000e+00> : vector<32x128xf32>
    %73 = tpu.matmul %68, %70, %cst_30 {dimension_numbers = #tpu.dot_dimension_numbers<[1], [0], [0], [1], [0, 0, 1, 1], [], []>} : vector<32x128xf32>, vector<128x128xf32>, vector<32x128xf32> -> vector<32x128xf32>
    %74 = vector.shape_cast %73 : vector<32x128xf32> to vector<4x8x128xf32>
    %cst_31 = arith.constant dense<0.000000e+00> : vector<4x128xf32>
    %75 = vector.multi_reduction <add>, %74, %cst_31 [1] : vector<4x8x128xf32> to vector<4x128xf32>
    %76 = vector.shape_cast %75 : vector<4x128xf32> to vector<4x1x128xf32>
    %cst_32 = arith.constant 1.250000e-01 : f32
    %77 = vector.broadcast %cst_32 : f32 to vector<4x1x128xf32>
    %78 = arith.mulf %76, %77 : vector<4x1x128xf32>
    %79 = vector.broadcast %78 : vector<4x1x128xf32> to vector<4x8x128xf32>
    %80 = arith.subf %74, %79 : vector<4x8x128xf32>
    %81 = arith.mulf %80, %80 : vector<4x8x128xf32>
    %cst_33 = arith.constant dense<0.000000e+00> : vector<4x128xf32>
    %82 = vector.multi_reduction <add>, %81, %cst_33 [1] : vector<4x8x128xf32> to vector<4x128xf32>
    %83 = vector.shape_cast %82 : vector<4x128xf32> to vector<4x1x128xf32>
    %cst_34 = arith.constant 1.250000e-01 : f32
    %84 = vector.broadcast %cst_34 : f32 to vector<4x1x128xf32>
    %85 = arith.mulf %83, %84 : vector<4x1x128xf32>
    %cst_35 = arith.constant 9.99999974E-6 : f32
    %86 = vector.broadcast %cst_35 : f32 to vector<4x1x128xf32>
    %87 = arith.addf %85, %86 : vector<4x1x128xf32>
    %88 = math.rsqrt %87 : vector<4x1x128xf32>
    %89 = vector.shape_cast %71 : vector<1x128xf32> to vector<1x1x128xf32>
    %90 = vector.broadcast %89 : vector<1x1x128xf32> to vector<4x1x128xf32>
    %91 = arith.mulf %90, %88 : vector<4x1x128xf32>
    %92 = arith.mulf %78, %91 : vector<4x1x128xf32>
    %93 = vector.shape_cast %72 : vector<1x128xf32> to vector<1x1x128xf32>
    %94 = vector.broadcast %93 : vector<1x1x128xf32> to vector<4x1x128xf32>
    %95 = arith.subf %94, %92 : vector<4x1x128xf32>
    %96 = vector.broadcast %91 : vector<4x1x128xf32> to vector<4x8x128xf32>
    %97 = arith.mulf %74, %96 : vector<4x8x128xf32>
    %98 = vector.broadcast %95 : vector<4x1x128xf32> to vector<4x8x128xf32>
    %99 = arith.addf %97, %98 : vector<4x8x128xf32>
    %cst_36 = arith.constant 0.000000e+00 : f32
    %100 = vector.broadcast %cst_36 : f32 to vector<4x8x128xf32>
    %101 = arith.maximumf %99, %100 : vector<4x8x128xf32>
    %102 = vector.shape_cast %101 : vector<4x8x128xf32> to vector<32x128xf32>
    %c0_37 = arith.constant 0 : index
    %c0_38 = arith.constant 0 : index
    %103 = vector.load %arg4[%c0_37, %c0_38] : memref<32x128xf32, #tpu.memory_space<vmem>>, vector<32x128xf32>
    tpu.vector_store %arg4[%c0_37, %c0_38], %102 {strides = array<i32>} : memref<32x128xf32, #tpu.memory_space<vmem>>, vector<32x128xf32>,
    return
  }
  func.func @transform_0(%arg0: i32) -> (i32, i32) {
    %c0_i32 = arith.constant 0 : i32
    %c0_i32_0 = arith.constant 0 : i32
    return %arg0, %c0_i32 : i32, i32
  }
  func.func @transform_1(%arg0: i32) -> (i32, i32, i32) {
    %c0_i32 = arith.constant 0 : i32
    %c0_i32_0 = arith.constant 0 : i32
    %c0_i32_1 = arith.constant 0 : i32
    %c0_i32_2 = arith.constant 0 : i32
    return %c0_i32, %c0_i32_0, %c0_i32_1 : i32, i32, i32
  }
  func.func @transform_2(%arg0: i32) -> (i32, i32) {
    %c0_i32 = arith.constant 0 : i32
    %c0_i32_0 = arith.constant 0 : i32
    %c0_i32_1 = arith.constant 0 : i32
    return %c0_i32, %c0_i32_0 : i32, i32
  }
  func.func @transform_3(%arg0: i32) -> (i32, i32) {
    %c0_i32 = arith.constant 0 : i32
    %c0_i32_0 = arith.constant 0 : i32
    return %arg0, %c0_i32 : i32, i32
  }
}

</mosaic_0001>

<bundles_post_ra>
// kernel: _predicate_encoder_call.1
= control target key start
LH: loop header
LB: loop body
LE: loop exit
PB: predicated region body
PF: predicated region fallthrough
CT: control target
= control target key end

     0   :  { %8 = vsyncpa [#allocation3], 0  ;;  %s1150_s0 = inlined_call_operand.hbm [shape: f32[32,32], index: 0, kind: input, shape index: {}]   ;;  %s1151_s1 = inlined_call_operand.hbm [shape: f32[3,128,128], index: 1, kind: input, shape index: {}]   ;;  %s1152_s2 = inlined_call_operand.hbm [shape: f32[6,128], index: 2, kind: input, shape index: {}]   ;;  %s1153_s3 = inlined_call_operand.vmem [shape: f32[32,128], index: 3, kind: output, shape index: {}]  }
   0x1   :  { %9 = vsyncpa [#allocation5], 0  ;;  %s998_s12 = smov [#allocation4]   ;;  %s999_s14 = smov [#allocation2]  }
   0x2   :  { %s27_s13 = sshll.u32 %s998_s12, 4  ;;  %s15_s15 = sshll.u32 %s999_s14, 4  ;;  %s28_s13 = int_to_ptr.vmem [resolvable:$true] %s27_s13  ;;  %s16_s15 = int_to_ptr.vmem [resolvable:$true] %s15_s15 }
   0x3   :  { %s942_s16 = scalar_lea.vmem %s28_s13, 6144  ;;  %p947_p1 = scmp.lt.s32.totalorder %s28_s13, %s28_s13 }
   0x4   :  { %p943_p0 = scmp.ne.s32.totalorder %s28_s13, %s942_s16  ;;  %p948_p2 = scmp.lt.s32.totalorder %s942_s16, %s942_s16 }
   0x6   :  { %p949_p3 = por %p948_p2, %p947_p1 }
   0x8   :  { %p950_p4 = pnand %p949_p3, %p943_p0 }
   0xa   :  { %953 = shalt.err (!%p950_p4)
}
   0xb   :  { %s1000_s17 = smov 128   ;;  %s1001_s18 = smov 8  }
   0xc   :  { %33 = dma.hbm_to_vmem [thread:$0]  %s1151_s1, 6144, %s28_s13, [#allocation5], %s1000_s17, %s1000_s17, %s1001_s18  }
   0xd   :  { %s962_s21 = scalar_lea.vmem %s16_s15, 512  ;;  %p967_p6 = scmp.lt.s32.totalorder %s16_s15, %s16_s15 }
   0xe   :  { %p963_p5 = scmp.ne.s32.totalorder %s16_s15, %s962_s21  ;;  %p968_p7 = scmp.lt.s32.totalorder %s962_s21, %s962_s21 }
  0x10   :  { %p969_p8 = por %p968_p7, %p967_p6 }
  0x12   :  { %p970_p9 = pnand %p969_p8, %p963_p5 }
  0x14   :  { %973 = shalt.err (!%p970_p9)
}
  0x15   :  { %21 = dma.hbm_to_vmem [thread:$0]  %s1150_s0, 512, %s16_s15, [#allocation3], %s1000_s17, %s1000_s17, %s1001_s18  }
  0x16   :  { %s1002_s24 = smov [#allocation6]  }
  0x17   :  { %s40_s25 = sshll.u32 %s1002_s24, 4  ;;  %s41_s25 = int_to_ptr.vmem [resolvable:$true] %s40_s25 }
  0x18   :  { %s982_s26 = scalar_lea.vmem %s41_s25, 128  ;;  %p987_p11 = scmp.lt.s32.totalorder %s41_s25, %s41_s25 }
  0x19   :  { %p983_p10 = scmp.ne.s32.totalorder %s41_s25, %s982_s26  ;;  %p988_p12 = scmp.lt.s32.totalorder %s982_s26, %s982_s26 }
  0x1b   :  { %p989_p13 = por %p988_p12, %p987_p11 }
  0x1d   :  { %p990_p0 = pnand %p989_p13, %p983_p10 }
  0x1f   :  { %993 = shalt.err (!%p990_p0)
}
  0x20   :  { %43 = dma.hbm_to_vmem [thread:$0]  %s1152_s2, 128, %s41_s25, [#allocation5]  }
  0x21   :  { %994 = dma.done.wait [#allocation3], 512  }
  0x22   :  { %995 = vsyncadd [#allocation3], 4294966784 }
  0x23   :  { %996 = dma.done.wait [#allocation5], 6272  }
  0x24   :  { %997 = vsyncadd [#allocation5], 4294961024  ;;  %vm63_vm0 = vcmask 261120   ;;  %v60_v0 = vld [vmem:[#allocation4 + $0x18] sm:$0xff]  ;;  %v59_v1 = vld [vmem:[#allocation4 + $0x10] sm:$0xff] }
  0x25   :  { %815 = vmatprep.subr.mxu0 %v60_v0  ;;  %v53_v2 = vld [vmem:[#allocation2] sm:$0xff]  ;;  %v58_v3 = vld [vmem:[#allocation4 + $0x8] sm:$0xff]  ;;  %v55_v6 = vld [vmem:[#allocation2 + $0x10] sm:$0xff] }
  0x26   :  { %816 = vmatpush3.msra.mxu0 %v60_v0  ;;  %823 = vmatprep.mubr.msk.f32.mxu0 %vm63_vm0, %v53_v2  ;;  %v57_v4 = vld [vmem:[#allocation4] sm:$0xff]  ;;  %v54_v5 = vld [vmem:[#allocation2 + $0x8] sm:$0xff]  ;;  %v56_v7 = vld [vmem:[#allocation2 + $0x18] sm:$0xff] }
  0x27   :  { %817 = vmatprep.subr.mxu0 %v59_v1  ;;  %v305_v8 = vld [vmem:[#allocation4 + $0xf8] sm:$0xff]  ;;  %v304_v9 = vld [vmem:[#allocation4 + $0xf0] sm:$0xff]  ;;  %v303_v10 = vld [vmem:[#allocation4 + $0xe8] sm:$0xff] }
  0x28   :  { %818 = vmatpush3.msra.mxu0 %v59_v1  ;;  %829 = vmatprep.subr.mxu1 %v305_v8  ;;  %v302_v11 = vld [vmem:[#allocation4 + $0xe0] sm:$0xff]  ;;  %v301_v12 = vld [vmem:[#allocation4 + $0xd8] sm:$0xff]  ;;  %v300_v13 = vld [vmem:[#allocation4 + $0xd0] sm:$0xff] }
  0x29   :  { %819 = vmatprep.subr.mxu0 %v58_v3  ;;  %830 = vmatpush3.msra.mxu1 %v305_v8  ;;  %v299_v14 = vld [vmem:[#allocation4 + $0xc8] sm:$0xff]  ;;  %v298_v15 = vld [vmem:[#allocation4 + $0xc0] sm:$0xff]  ;;  %v297_v16 = vld [vmem:[#allocation4 + $0xb8] sm:$0xff] }
  0x2a   :  { %820 = vmatpush3.msra.mxu0 %v58_v3  ;;  %831 = vmatprep.subr.mxu1 %v304_v9  ;;  %v296_v17 = vld [vmem:[#allocation4 + $0xb0] sm:$0xff]  ;;  %v295_v18 = vld [vmem:[#allocation4 + $0xa8] sm:$0xff]  ;;  %v294_v19 = vld [vmem:[#allocation4 + $0xa0] sm:$0xff] }
  0x2b   :  { %821 = vmatprep.subr.mxu0 %v57_v4  ;;  %832 = vmatpush3.msra.mxu1 %v304_v9  ;;  %v293_v20 = vld [vmem:[#allocation4 + $0x98] sm:$0xff]  ;;  %v292_v21 = vld [vmem:[#allocation4 + $0x90] sm:$0xff]  ;;  %v291_v22 = vld [vmem:[#allocation4 + $0x88] sm:$0xff] }
  0x2c   :  { %822 = vmatpush3.msra.mxu0 %v57_v4  ;;  %833 = vmatprep.subr.mxu1 %v303_v10  ;;  %v290_v23 = vld [vmem:[#allocation4 + $0x80] sm:$0xff] }
  0x2d   :  { %824 = vmatmul.mubr.msk.f32.vlgmr.msra.gmra.mxu0 %vm63_vm0, %v54_v5  ;;  %834 = vmatpush3.msra.mxu1 %v303_v10 }
  0x2e   :  { %826 = vmatprep.mubr.msk.f32.mxu0 %vm63_vm0, %v55_v6  ;;  %835 = vmatprep.subr.mxu1 %v302_v11 }
  0x2f   :  { %836 = vmatpush3.msra.mxu1 %v302_v11 }
  0x30   :  { %837 = vmatprep.subr.mxu1 %v301_v12 }
  0x31   :  { %827 = vmatmul.mubr.msk.f32.gmra.mxu0 %vm63_vm0, %v56_v7  ;;  %838 = vmatpush3.msra.mxu1 %v301_v12 }
  0x32   :  { %839 = vmatprep.subr.mxu1 %v300_v13 }
  0x33   :  { %840 = vmatpush3.msra.mxu1 %v300_v13 }
  0x34   :  { %841 = vmatprep.subr.mxu1 %v299_v14 }
  0x35   :  { %842 = vmatpush3.msra.mxu1 %v299_v14 }
  0x36   :  { %843 = vmatprep.subr.mxu1 %v298_v15 }
  0x37   :  { %844 = vmatpush3.msra.mxu1 %v298_v15 }
  0x38   :  { %845 = vmatprep.subr.mxu1 %v297_v16 }
  0x39   :  { %846 = vmatpush3.msra.mxu1 %v297_v16 }
  0x3a   :  { %847 = vmatprep.subr.mxu1 %v296_v17 }
  0x3b   :  { %848 = vmatpush3.msra.mxu1 %v296_v17 }
  0x3c   :  { %849 = vmatprep.subr.mxu1 %v295_v18 }
  0x3d   :  { %850 = vmatpush3.msra.mxu1 %v295_v18 }
  0x3e   :  { %851 = vmatprep.subr.mxu1 %v294_v19 }
  0x3f   :  { %852 = vmatpush3.msra.mxu1 %v294_v19 }
  0x40   :  { %853 = vmatprep.subr.mxu1 %v293_v20 }
  0x41   :  { %854 = vmatpush3.msra.mxu1 %v293_v20 }
  0x42   :  { %855 = vmatprep.subr.mxu1 %v292_v21 }
  0x43   :  { %856 = vmatpush3.msra.mxu1 %v292_v21 }
  0x44   :  { %857 = vmatprep.subr.mxu1 %v291_v22 }
  0x45   :  { %858 = vmatpush3.msra.mxu1 %v291_v22 }
  0x46   :  { %859 = vmatprep.subr.mxu1 %v290_v23 }
  0x47   :  { %860 = vmatpush3.msra.mxu1 %v290_v23 }
  0xed   :  { %v1036_v24 = vpop.f32.mrf.mxu0 }
  0xee   :  { %v167_v25 = vrot.slane %v1036_v24, 4 }
  0xef   :  { %v1039_v26 = vpop.f32.mrf.mxu0 }
  0xf0   :  { %v168_v27 = vadd.f32 %v1036_v24, %v167_v25  ;;  %v161_v28 = vrot.slane %v1039_v26, 4 }
  0xf1   :  { %v1043_v29 = vpop.f32.mrf.mxu0 }
  0xf2   :  { %v169_v30 = vrot.slane %v168_v27, 2  ;;  %v162_v31 = vadd.f32 %v161_v28, %v1039_v26  ;;  %v179_v32 = vrot.slane %v1043_v29, 4 }
  0xf3   :  { %v1047_v33 = vpop.f32.mrf.mxu0 }
  0xf4   :  { %v170_v34 = vadd.f32 %v169_v30, %v168_v27  ;;  %v163_v35 = vrot.slane %v162_v31, 2  ;;  %v180_v36 = vadd.f32 %v1043_v29, %v179_v32  ;;  %v173_v37 = vrot.slane %v1047_v33, 4 }
  0xf6   :  { %v171_v38 = vrot.slane %v170_v34, 1  ;;  %v164_v39 = vadd.f32 %v163_v35, %v162_v31  ;;  %v181_v40 = vrot.slane %v180_v36, 2  ;;  %v174_v41 = vadd.f32 %v173_v37, %v1047_v33 }
  0xf8   :  { %v172_v42 = vadd.f32 %v171_v38, %v170_v34  ;;  %v165_v43 = vrot.slane %v164_v39, 1  ;;  %v182_v44 = vadd.f32 %v181_v40, %v180_v36  ;;  %v175_v45 = vrot.slane %v174_v41, 2  ;;  %v61_v38 = vld [vmem:[#allocation6] sm:$0x1] }
  0xf9   :  { %v245_v36 = vlaneseq }
  0xfa   :  { %v186_v46 = vmul.f32 0.125, %v172_v42  ;;  %v166_v47 = vadd.f32 %v165_v43, %v164_v39  ;;  %v183_v48 = vrot.slane %v182_v44, 1  ;;  %v176_v49 = vadd.f32 %v175_v45, %v174_v41 }
  0xfb   :  { %v246_v37 = vshrl.u32 %v245_v36, 7 }
  0xfc   :  { %v190_v50 = vsub.f32 %v1036_v24, %v186_v46  ;;  %v185_v51 = vmul.f32 0.125, %v166_v47  ;;  %v184_v52 = vadd.f32 %v183_v48, %v182_v44  ;;  %v177_v53 = vrot.slane %v176_v49, 1  ;;  %v62_v44 = vld [vmem:[#allocation6 + $0x3] sm:$0x1] }
  0xfd   :  { %v1056_v40 = vsub.s32 0, %v246_v37 }
  0xfe   :  { %v194_v54 = vmul.f32 %v190_v50, %v190_v50  ;;  %v189_v55 = vsub.f32 %v1039_v26, %v185_v51  ;;  %v188_v56 = vmul.f32 0.125, %v184_v52  ;;  %v178_v57 = vadd.f32 %v177_v53, %v176_v49 }
 0x100   :  { %v203_v58 = vrot.slane %v194_v54, 4  ;;  %v193_v59 = vmul.f32 %v189_v55, %v189_v55  ;;  %v192_v60 = vsub.f32 %v1043_v29, %v188_v56  ;;  %v187_v61 = vmul.f32 0.125, %v178_v57 }
 0x102   :  { %v204_v62 = vadd.f32 %v203_v58, %v194_v54  ;;  %v197_v63 = vrot.slane %v193_v59, 4  ;;  %v196_v0 = vmul.f32 %v192_v60, %v192_v60  ;;  %v191_v1 = vsub.f32 %v1047_v33, %v187_v61 }
 0x104   :  { %v205_v2 = vrot.slane %v204_v62, 2  ;;  %v198_v3 = vadd.f32 %v197_v63, %v193_v59  ;;  %v215_v4 = vrot.slane %v196_v0, 4  ;;  %v195_v5 = vmul.f32 %v191_v1, %v191_v1 }
 0x106   :  { %v206_v6 = vadd.f32 %v205_v2, %v204_v62  ;;  %v199_v7 = vrot.slane %v198_v3, 2  ;;  %v216_v8 = vadd.f32 %v215_v4, %v196_v0  ;;  %v209_v9 = vrot.slane %v195_v5, 4 }
 0x108   :  { %v207_v10 = vrot.slane %v206_v6, 1  ;;  %v200_v11 = vadd.f32 %v199_v7, %v198_v3  ;;  %v217_v12 = vrot.slane %v216_v8, 2  ;;  %v210_v13 = vadd.f32 %v209_v9, %v195_v5 }
 0x10a   :  { %v208_v14 = vadd.f32 %v207_v10, %v206_v6  ;;  %v201_v15 = vrot.slane %v200_v11, 1  ;;  %v218_v16 = vadd.f32 %v217_v12, %v216_v8  ;;  %v211_v17 = vrot.slane %v210_v13, 2  ;;  %v535_v12 = vld [vmem:[#allocation4 + $0x168] sm:$0xff] }
 0x10c   :  { %v222_v18 = vmul.f32 0.125, %v208_v14  ;;  %v202_v19 = vadd.f32 %v201_v15, %v200_v11  ;;  %v219_v20 = vrot.slane %v218_v16, 1  ;;  %v212_v21 = vadd.f32 %v211_v17, %v210_v13  ;;  %v537_v11 = vld [vmem:[#allocation4 + $0x178] sm:$0xff]  ;;  %v532_v14 = vld [vmem:[#allocation4 + $0x150] sm:$0xff]  ;;  %v531_v15 = vld [vmem:[#allocation4 + $0x148] sm:$0xff] }
 0x10d   :  { %867 = vmatprep.subr.mxu0 %v537_v11  ;;  %v533_v13 = vld [vmem:[#allocation4 + $0x158] sm:$0xff] }
 0x10e   :  { %v226_v22 = vadd.f32 1e-05, %v222_v18  ;;  %v221_v23 = vmul.f32 0.125, %v202_v19  ;;  %v220_v25 = vadd.f32 %v219_v20, %v218_v16  ;;  %v213_v27 = vrot.slane %v212_v21, 1  ;;  %868 = vmatpush3.msra.mxu0 %v537_v11  ;;  %v530_v16 = vld [vmem:[#allocation4 + $0x140] sm:$0xff]  ;;  %v529_v17 = vld [vmem:[#allocation4 + $0x138] sm:$0xff] }
 0x10f   :  { %v528_v18 = vld [vmem:[#allocation4 + $0x130] sm:$0xff]  ;;  %v527_v19 = vld [vmem:[#allocation4 + $0x128] sm:$0xff]  ;;  %v526_v20 = vld [vmem:[#allocation4 + $0x120] sm:$0xff] }
 0x110   :  { %910 = vrsqrt.f32 %v226_v22  ;;  %v225_v28 = vadd.f32 1e-05, %v221_v23  ;;  %v224_v30 = vmul.f32 0.125, %v220_v25  ;;  %v214_v31 = vadd.f32 %v213_v27, %v212_v21  ;;  %v525_v21 = vld [vmem:[#allocation4 + $0x118] sm:$0xff]  ;;  %v524_v22 = vld [vmem:[#allocation4 + $0x110] sm:$0xff]  ;;  %v523_v23 = vld [vmem:[#allocation4 + $0x108] sm:$0xff] }
 0x111   :  { %v522_v25 = vld [vmem:[#allocation4 + $0x100] sm:$0xff] }
 0x112   :  { %912 = vrsqrt.f32 %v225_v28  ;;  %v228_v32 = vadd.f32 1e-05, %v224_v30  ;;  %v223_v34 = vmul.f32 0.125, %v214_v31 }
 0x114   :  { %914 = vrsqrt.f32 %v228_v32  ;;  %v227_v35 = vadd.f32 1e-05, %v223_v34 }
 0x116   :  { %916 = vrsqrt.f32 %v227_v35 }
 0x11d   :  { %v911_v39 = vpop.eup %910 }
 0x11e   :  { %v234_v41 = vmul.f32 %v911_v39, %v61_v38 }
 0x11f   :  { %v913_v42 = vpop.eup %912 }
 0x120   :  { %v238_v43 = vmul.f32 %v234_v41, %v186_v46  ;;  %v233_v45 = vmul.f32 %v913_v42, %v61_v38  ;;  %v252_v48 = vrot.slane %v234_v41, %v1056_v40 }
 0x121   :  { %v915_v47 = vpop.eup %914 }
 0x122   :  { %v236_v49 = vmul.f32 %v915_v47, %v61_v38  ;;  %v237_v50 = vmul.f32 %v233_v45, %v185_v51  ;;  %v248_v52 = vrot.slane %v233_v45, %v1056_v40  ;;  %v242_v54 = vsub.f32 %v62_v44, %v238_v43 }
 0x123   :  { %v917_v53 = vpop.eup %916  ;;  %v262_v59 = vmul.f32 %v1036_v24, %v252_v48 }
 0x124   :  { %v240_v55 = vmul.f32 %v236_v49, %v188_v56  ;;  %v235_v57 = vmul.f32 %v917_v53, %v61_v38  ;;  %v241_v58 = vsub.f32 %v62_v44, %v237_v50  ;;  %v260_v60 = vrot.slane %v236_v49, %v1056_v40 }
 0x125   :  { %v272_v46 = vrot.slane %v242_v54, %v1056_v40  ;;  %v261_v0 = vmul.f32 %v248_v52, %v1039_v26 }
 0x126   :  { %v239_v62 = vmul.f32 %v235_v57, %v187_v61  ;;  %v256_v63 = vrot.slane %v235_v57, %v1056_v40  ;;  %v268_v51 = vrot.slane %v241_v58, %v1056_v40  ;;  %v244_v2 = vsub.f32 %v62_v44, %v240_v55 }
 0x127   :  { %v282_v1 = vadd.f32 %v272_v46, %v262_v59  ;;  %v264_v56 = vmul.f32 %v1043_v29, %v260_v60  ;;  %v536_v29 = vld [vmem:[#allocation4 + $0x170] sm:$0xff] }
 0x128   :  { %v281_v3 = vadd.f32 %v268_v51, %v261_v0  ;;  %v243_v4 = vsub.f32 %v62_v44, %v239_v62  ;;  %v280_v5 = vrot.slane %v244_v2, %v1056_v40  ;;  %v263_v24 = vmul.f32 %v256_v63, %v1047_v33  ;;  %869 = vmatprep.subr.mxu0 %v536_v29  ;;  %v534_v33 = vld [vmem:[#allocation4 + $0x160] sm:$0xff] }
 0x129   :  { %v286_v61 = vmax.f32 %v282_v1, 0.0  ;;  %870 = vmatpush3.msra.mxu0 %v536_v29 }
 0x12a   :  { %v285_v6 = vmax.f32 %v281_v3, 0.0  ;;  %v276_v7 = vrot.slane %v243_v4, %v1056_v40  ;;  %v284_v8 = vadd.f32 %v280_v5, %v264_v56  ;;  %871 = vmatprep.subr.mxu0 %v535_v12 }
 0x12b   :  { %872 = vmatpush3.msra.mxu0 %v535_v12 }
 0x12c   :  { %861 = vmatprep.mubr.f32.mxu1 %v285_v6  ;;  %v283_v9 = vadd.f32 %v276_v7, %v263_v24  ;;  %v288_v10 = vmax.f32 %v284_v8, 0.0  ;;  %873 = vmatprep.subr.mxu0 %v534_v33 }
 0x12d   :  { %862 = vmatmul.mubr.f32.vlgmr.msra.gmra.mxu1 %v286_v61  ;;  %874 = vmatpush3.msra.mxu0 %v534_v33 }
 0x12e   :  { %v287_v26 = vmax.f32 %v283_v9, 0.0  ;;  %875 = vmatprep.subr.mxu0 %v533_v13 }
 0x12f   :  { %876 = vmatpush3.msra.mxu0 %v533_v13 }
 0x130   :  { %864 = vmatprep.mubr.f32.mxu1 %v287_v26  ;;  %877 = vmatprep.subr.mxu0 %v532_v14 }
 0x131   :  { %865 = vmatmul.mubr.f32.gmra.mxu1 %v288_v10  ;;  %878 = vmatpush3.msra.mxu0 %v532_v14 }
 0x132   :  { %879 = vmatprep.subr.mxu0 %v531_v15 }
 0x133   :  { %880 = vmatpush3.msra.mxu0 %v531_v15 }
 0x134   :  { %881 = vmatprep.subr.mxu0 %v530_v16 }
 0x135   :  { %882 = vmatpush3.msra.mxu0 %v530_v16 }
 0x136   :  { %883 = vmatprep.subr.mxu0 %v529_v17 }
 0x137   :  { %884 = vmatpush3.msra.mxu0 %v529_v17 }
 0x138   :  { %885 = vmatprep.subr.mxu0 %v528_v18 }
 0x139   :  { %886 = vmatpush3.msra.mxu0 %v528_v18 }
 0x13a   :  { %887 = vmatprep.subr.mxu0 %v527_v19 }
 0x13b   :  { %888 = vmatpush3.msra.mxu0 %v527_v19 }
 0x13c   :  { %889 = vmatprep.subr.mxu0 %v526_v20 }
 0x13d   :  { %890 = vmatpush3.msra.mxu0 %v526_v20 }
 0x13e   :  { %891 = vmatprep.subr.mxu0 %v525_v21 }
 0x13f   :  { %892 = vmatpush3.msra.mxu0 %v525_v21 }
 0x140   :  { %893 = vmatprep.subr.mxu0 %v524_v22 }
 0x141   :  { %894 = vmatpush3.msra.mxu0 %v524_v22 }
 0x142   :  { %895 = vmatprep.subr.mxu0 %v523_v23 }
 0x143   :  { %896 = vmatpush3.msra.mxu0 %v523_v23 }
 0x144   :  { %897 = vmatprep.subr.mxu0 %v522_v25 }
 0x145   :  { %898 = vmatpush3.msra.mxu0 %v522_v25 }
 0x1ed   :  { %v1070_v27 = vpop.f32.mrf.mxu1 }
 0x1ee   :  { %v399_v28 = vrot.slane %v1070_v27, 4 }
 0x1ef   :  { %v1073_v30 = vpop.f32.mrf.mxu1 }
 0x1f0   :  { %v400_v31 = vadd.f32 %v1070_v27, %v399_v28  ;;  %v393_v32 = vrot.slane %v1073_v30, 4 }
 0x1f1   :  { %v1077_v34 = vpop.f32.mrf.mxu1 }
 0x1f2   :  { %v401_v35 = vrot.slane %v400_v31, 2  ;;  %v394_v36 = vadd.f32 %v393_v32, %v1073_v30  ;;  %v411_v37 = vrot.slane %v1077_v34, 4 }
 0x1f3   :  { %v1081_v38 = vpop.f32.mrf.mxu1 }
 0x1f4   :  { %v402_v39 = vadd.f32 %v401_v35, %v400_v31  ;;  %v395_v41 = vrot.slane %v394_v36, 2  ;;  %v412_v42 = vadd.f32 %v1077_v34, %v411_v37  ;;  %v405_v43 = vrot.slane %v1081_v38, 4 }
 0x1f6   :  { %v403_v44 = vrot.slane %v402_v39, 1  ;;  %v396_v45 = vadd.f32 %v395_v41, %v394_v36  ;;  %v413_v47 = vrot.slane %v412_v42, 2  ;;  %v406_v48 = vadd.f32 %v405_v43, %v1081_v38  ;;  %v306_v43 = vld [vmem:[#allocation6 + $0x1] sm:$0x1] }
 0x1f8   :  { %v404_v49 = vadd.f32 %v403_v44, %v402_v39  ;;  %v397_v50 = vrot.slane %v396_v45, 1  ;;  %v414_v52 = vadd.f32 %v413_v47, %v412_v42  ;;  %v407_v53 = vrot.slane %v406_v48, 2 }
 0x1fa   :  { %v418_v54 = vmul.f32 0.125, %v404_v49  ;;  %v398_v55 = vadd.f32 %v397_v50, %v396_v45  ;;  %v415_v57 = vrot.slane %v414_v52, 1  ;;  %v408_v58 = vadd.f32 %v407_v53, %v406_v48  ;;  %v307_v48 = vld [vmem:[#allocation6 + $0x4] sm:$0x1] }
 0x1fc   :  { %v422_v59 = vsub.f32 %v1070_v27, %v418_v54  ;;  %v417_v60 = vmul.f32 0.125, %v398_v55  ;;  %v416_v46 = vadd.f32 %v415_v57, %v414_v52  ;;  %v409_v62 = vrot.slane %v408_v58, 1 }
 0x1fe   :  { %v426_v63 = vmul.f32 %v422_v59, %v422_v59  ;;  %v421_v0 = vsub.f32 %v1073_v30, %v417_v60  ;;  %v420_v51 = vmul.f32 0.125, %v416_v46  ;;  %v410_v1 = vadd.f32 %v409_v62, %v408_v58 }
 0x200   :  { %v435_v2 = vrot.slane %v426_v63, 4  ;;  %v425_v3 = vmul.f32 %v421_v0, %v421_v0  ;;  %v424_v4 = vsub.f32 %v1077_v34, %v420_v51  ;;  %v419_v56 = vmul.f32 0.125, %v410_v1 }
 0x202   :  { %v436_v5 = vadd.f32 %v435_v2, %v426_v63  ;;  %v429_v24 = vrot.slane %v425_v3, 4  ;;  %v428_v6 = vmul.f32 %v424_v4, %v424_v4  ;;  %v423_v7 = vsub.f32 %v1081_v38, %v419_v56 }
 0x204   :  { %v437_v61 = vrot.slane %v436_v5, 2  ;;  %v430_v8 = vadd.f32 %v429_v24, %v425_v3  ;;  %v447_v9 = vrot.slane %v428_v6, 4  ;;  %v427_v26 = vmul.f32 %v423_v7, %v423_v7 }
 0x206   :  { %v438_v10 = vadd.f32 %v437_v61, %v436_v5  ;;  %v431_v11 = vrot.slane %v430_v8, 2  ;;  %v448_v29 = vadd.f32 %v447_v9, %v428_v6  ;;  %v441_v12 = vrot.slane %v427_v26, 4 }
 0x208   :  { %v439_v33 = vrot.slane %v438_v10, 1  ;;  %v432_v13 = vadd.f32 %v431_v11, %v430_v8  ;;  %v449_v14 = vrot.slane %v448_v29, 2  ;;  %v442_v15 = vadd.f32 %v441_v12, %v427_v26 }
 0x20a   :  { %v440_v16 = vadd.f32 %v439_v33, %v438_v10  ;;  %v433_v17 = vrot.slane %v432_v13, 1  ;;  %v450_v18 = vadd.f32 %v449_v14, %v448_v29  ;;  %v443_v19 = vrot.slane %v442_v15, 2 }
 0x20c   :  { %v454_v20 = vmul.f32 0.125, %v440_v16  ;;  %v434_v21 = vadd.f32 %v433_v17, %v432_v13  ;;  %v451_v22 = vrot.slane %v450_v18, 1  ;;  %v444_v23 = vadd.f32 %v443_v19, %v442_v15 }
 0x20e   :  { %v458_v25 = vadd.f32 1e-05, %v454_v20  ;;  %v453_v28 = vmul.f32 0.125, %v434_v21  ;;  %v452_v31 = vadd.f32 %v451_v22, %v450_v18  ;;  %v445_v32 = vrot.slane %v444_v23, 1 }
 0x210   :  { %918 = vrsqrt.f32 %v458_v25  ;;  %v457_v35 = vadd.f32 1e-05, %v453_v28  ;;  %v456_v36 = vmul.f32 0.125, %v452_v31  ;;  %v446_v37 = vadd.f32 %v445_v32, %v444_v23 }
 0x212   :  { %920 = vrsqrt.f32 %v457_v35  ;;  %v460_v39 = vadd.f32 1e-05, %v456_v36  ;;  %v455_v41 = vmul.f32 0.125, %v446_v37 }
 0x214   :  { %922 = vrsqrt.f32 %v460_v39  ;;  %v459_v42 = vadd.f32 1e-05, %v455_v41 }
 0x216   :  { %924 = vrsqrt.f32 %v459_v42 }
 0x21d   :  { %v919_v44 = vpop.eup %918 }
 0x21e   :  { %v466_v45 = vmul.f32 %v919_v44, %v306_v43 }
 0x21f   :  { %v921_v47 = vpop.eup %920 }
 0x220   :  { %v470_v49 = vmul.f32 %v466_v45, %v418_v54  ;;  %v465_v50 = vmul.f32 %v921_v47, %v306_v43  ;;  %v484_v53 = vrot.slane %v466_v45, %v1056_v40 }
 0x221   :  { %v923_v52 = vpop.eup %922 }
 0x222   :  { %v474_v55 = vsub.f32 %v307_v48, %v470_v49  ;;  %v469_v57 = vmul.f32 %v465_v50, %v417_v60  ;;  %v480_v58 = vrot.slane %v465_v50, %v1056_v40  ;;  %v468_v46 = vmul.f32 %v923_v52, %v306_v43 }
 0x223   :  { %v925_v59 = vpop.eup %924  ;;  %v494_v1 = vmul.f32 %v1070_v27, %v484_v53 }
 0x224   :  { %v504_v62 = vrot.slane %v474_v55, %v1056_v40  ;;  %v467_v63 = vmul.f32 %v925_v59, %v306_v43  ;;  %v473_v0 = vsub.f32 %v307_v48, %v469_v57  ;;  %v472_v2 = vmul.f32 %v468_v46, %v420_v51 }
 0x225   :  { %v492_v3 = vrot.slane %v468_v46, %v1056_v40  ;;  %v493_v54 = vmul.f32 %v480_v58, %v1073_v30 }
 0x226   :  { %v471_v4 = vmul.f32 %v467_v63, %v419_v56  ;;  %v488_v5 = vrot.slane %v467_v63, %v1056_v40  ;;  %v500_v60 = vrot.slane %v473_v0, %v1056_v40  ;;  %v514_v24 = vadd.f32 %v504_v62, %v494_v1 }
 0x227   :  { %v476_v6 = vsub.f32 %v307_v48, %v472_v2  ;;  %v496_v8 = vmul.f32 %v1077_v34, %v492_v3 }
 0x228   :  { %v513_v7 = vadd.f32 %v500_v60, %v493_v54  ;;  %v475_v61 = vsub.f32 %v307_v48, %v471_v4  ;;  %v495_v27 = vmul.f32 %v488_v5, %v1081_v38  ;;  %v518_v10 = vmax.f32 %v514_v24, 0.0 }
 0x229   :  { %v512_v9 = vrot.slane %v476_v6, %v1056_v40 }
 0x22a   :  { %v517_v51 = vmax.f32 %v513_v7, 0.0  ;;  %v508_v26 = vrot.slane %v475_v61, %v1056_v40 }
 0x22b   :  { %v516_v30 = vadd.f32 %v512_v9, %v496_v8 }
 0x22c   :  { %899 = vmatprep.mubr.f32.mxu0 %v517_v51  ;;  %v515_v56 = vadd.f32 %v508_v26, %v495_v27 }
 0x22d   :  { %900 = vmatmul.mubr.f32.vlgmr.msra.gmra.mxu0 %v518_v10  ;;  %v520_v29 = vmax.f32 %v516_v30, 0.0 }
 0x22e   :  { %v519_v11 = vmax.f32 %v515_v56, 0.0 }
 0x230   :  { %902 = vmatprep.mubr.f32.mxu0 %v519_v11 }
 0x231   :  { %903 = vmatmul.mubr.f32.gmra.mxu0 %v520_v29 }
 0x2ed   :  { %v1102_v12 = vpop.f32.mrf.mxu0 }
 0x2ee   :  { %v631_v34 = vrot.slane %v1102_v12, 4 }
 0x2ef   :  { %v1105_v33 = vpop.f32.mrf.mxu0 }
 0x2f0   :  { %v632_v38 = vadd.f32 %v1102_v12, %v631_v34  ;;  %v625_v13 = vrot.slane %v1105_v33, 4 }
 0x2f1   :  { %v1109_v14 = vpop.f32.mrf.mxu0 }
 0x2f2   :  { %v633_v15 = vrot.slane %v632_v38, 2  ;;  %v626_v16 = vadd.f32 %v625_v13, %v1105_v33  ;;  %v643_v17 = vrot.slane %v1109_v14, 4 }
 0x2f3   :  { %v1113_v18 = vpop.f32.mrf.mxu0 }
 0x2f4   :  { %v634_v19 = vadd.f32 %v633_v15, %v632_v38  ;;  %v627_v20 = vrot.slane %v626_v16, 2  ;;  %v644_v21 = vadd.f32 %v1109_v14, %v643_v17  ;;  %v637_v22 = vrot.slane %v1113_v18, 4 }
 0x2f6   :  { %v635_v23 = vrot.slane %v634_v19, 1  ;;  %v628_v25 = vadd.f32 %v627_v20, %v626_v16  ;;  %v645_v28 = vrot.slane %v644_v21, 2  ;;  %v638_v31 = vadd.f32 %v637_v22, %v1113_v18  ;;  %v538_v22 = vld [vmem:[#allocation6 + $0x2] sm:$0x1] }
 0x2f8   :  { %v636_v32 = vadd.f32 %v635_v23, %v634_v19  ;;  %v629_v35 = vrot.slane %v628_v25, 1  ;;  %v646_v36 = vadd.f32 %v645_v28, %v644_v21  ;;  %v639_v37 = vrot.slane %v638_v31, 2 }
 0x2fa   :  { %v650_v39 = vmul.f32 0.125, %v636_v32  ;;  %v630_v41 = vadd.f32 %v629_v35, %v628_v25  ;;  %v647_v42 = vrot.slane %v646_v36, 1  ;;  %v640_v43 = vadd.f32 %v639_v37, %v638_v31  ;;  %v539_v31 = vld [vmem:[#allocation6 + $0x5] sm:$0x1] }
 0x2fc   :  { %v654_v44 = vsub.f32 %v1102_v12, %v650_v39  ;;  %v649_v45 = vmul.f32 0.125, %v630_v41  ;;  %v648_v47 = vadd.f32 %v647_v42, %v646_v36  ;;  %v641_v48 = vrot.slane %v640_v43, 1 }
 0x2fe   :  { %v658_v49 = vmul.f32 %v654_v44, %v654_v44  ;;  %v653_v50 = vsub.f32 %v1105_v33, %v649_v45  ;;  %v1120_v52 = vmul.f32 0.125, %v648_v47  ;;  %v642_v53 = vadd.f32 %v641_v48, %v640_v43 }
 0x300   :  { %v667_v55 = vrot.slane %v658_v49, 4  ;;  %v657_v57 = vmul.f32 %v653_v50, %v653_v50  ;;  %v656_v58 = vsub.f32 %v1109_v14, %v1120_v52  ;;  %v651_v59 = vmul.f32 0.125, %v642_v53 }
 0x302   :  { %v668_v46 = vadd.f32 %v667_v55, %v658_v49  ;;  %v661_v62 = vrot.slane %v657_v57, 4  ;;  %v660_v63 = vmul.f32 %v656_v58, %v656_v58  ;;  %v655_v0 = vsub.f32 %v1113_v18, %v651_v59 }
 0x304   :  { %v669_v1 = vrot.slane %v668_v46, 2  ;;  %v662_v2 = vadd.f32 %v661_v62, %v657_v57  ;;  %v679_v3 = vrot.slane %v660_v63, 4  ;;  %v659_v54 = vmul.f32 %v655_v0, %v655_v0 }
 0x306   :  { %v670_v4 = vadd.f32 %v669_v1, %v668_v46  ;;  %v663_v5 = vrot.slane %v662_v2, 2  ;;  %v680_v60 = vadd.f32 %v679_v3, %v660_v63  ;;  %v673_v24 = vrot.slane %v659_v54, 4 }
 0x308   :  { %v671_v6 = vrot.slane %v670_v4, 1  ;;  %v664_v7 = vadd.f32 %v663_v5, %v662_v2  ;;  %v681_v61 = vrot.slane %v680_v60, 2  ;;  %v674_v8 = vadd.f32 %v673_v24, %v659_v54 }
 0x30a   :  { %v672_v9 = vadd.f32 %v671_v6, %v670_v4  ;;  %v665_v27 = vrot.slane %v664_v7, 1  ;;  %v682_v51 = vadd.f32 %v681_v61, %v680_v60  ;;  %v675_v26 = vrot.slane %v674_v8, 2 }
 0x30c   :  { %v686_v10 = vmul.f32 0.125, %v672_v9  ;;  %v666_v30 = vadd.f32 %v665_v27, %v664_v7  ;;  %v683_v56 = vrot.slane %v682_v51, 1  ;;  %v676_v11 = vadd.f32 %v675_v26, %v674_v8 }
 0x30e   :  { %v690_v29 = vadd.f32 1e-05, %v686_v10  ;;  %v685_v34 = vmul.f32 0.125, %v666_v30  ;;  %v684_v38 = vadd.f32 %v683_v56, %v682_v51  ;;  %v677_v13 = vrot.slane %v676_v11, 1 }
 0x310   :  { %926 = vrsqrt.f32 %v690_v29  ;;  %v689_v15 = vadd.f32 1e-05, %v685_v34  ;;  %v688_v16 = vmul.f32 0.125, %v684_v38  ;;  %v678_v17 = vadd.f32 %v677_v13, %v676_v11 }
 0x312   :  { %928 = vrsqrt.f32 %v689_v15  ;;  %v692_v19 = vadd.f32 1e-05, %v688_v16  ;;  %v687_v20 = vmul.f32 0.125, %v678_v17 }
 0x314   :  { %930 = vrsqrt.f32 %v692_v19  ;;  %v691_v21 = vadd.f32 1e-05, %v687_v20 }
 0x316   :  { %932 = vrsqrt.f32 %v691_v21 }
 0x31d   :  { %v927_v23 = vpop.eup %926 }
 0x31e   :  { %v698_v25 = vmul.f32 %v927_v23, %v538_v22 }
 0x31f   :  { %v929_v28 = vpop.eup %928 }
 0x320   :  { %v702_v32 = vmul.f32 %v698_v25, %v650_v39  ;;  %v716_v35 = vrot.slane %v698_v25, %v1056_v40  ;;  %v697_v36 = vmul.f32 %v929_v28, %v538_v22 }
 0x321   :  { %v931_v37 = vpop.eup %930 }
 0x322   :  { %v706_v41 = vsub.f32 %v539_v31, %v702_v32  ;;  %v701_v42 = vmul.f32 %v697_v36, %v649_v45  ;;  %v712_v43 = vrot.slane %v697_v36, %v1056_v40  ;;  %v700_v47 = vmul.f32 %v931_v37, %v538_v22 }
 0x323   :  { %v933_v44 = vpop.eup %932  ;;  %v726_v48 = vmul.f32 %v1102_v12, %v716_v35 }
 0x324   :  { %v736_v49 = vrot.slane %v706_v41, %v1056_v40  ;;  %v705_v50 = vsub.f32 %v539_v31, %v701_v42  ;;  %v699_v53 = vmul.f32 %v933_v44, %v538_v22  ;;  %v725_v55 = vmul.f32 %v712_v43, %v1105_v33 }
 0x325   :  { %v704_v39 = vmul.f32 %v700_v47, %v1120_v52  ;;  %v724_v57 = vrot.slane %v700_v47, %v1056_v40 }
 0x326   :  { %v746_v58 = vadd.f32 %v736_v49, %v726_v48  ;;  %v732_v46 = vrot.slane %v705_v50, %v1056_v40  ;;  %v703_v45 = vmul.f32 %v699_v53, %v651_v59  ;;  %v720_v62 = vrot.slane %v699_v53, %v1056_v40 }
 0x327   :  { %v708_v63 = vsub.f32 %v539_v31, %v704_v39  ;;  %v728_v2 = vmul.f32 %v1109_v14, %v724_v57 }
 0x328   :  { %v750_v0 = vmax.f32 %v746_v58, 0.0  ;;  %v745_v1 = vadd.f32 %v732_v46, %v725_v55  ;;  %v707_v12 = vsub.f32 %v539_v31, %v703_v45  ;;  %v727_v52 = vmul.f32 %v720_v62, %v1113_v18 }
 0x329   :  { %v744_v3 = vrot.slane %v708_v63, %v1056_v40 }
 0x32a   :  { %754 = vst [vmem:[%s1153_s3 + $0x8] sm:$0xff] %v750_v0  ;;  %v749_v33 = vmax.f32 %v745_v1, 0.0  ;;  %v740_v54 = vrot.slane %v707_v12, %v1056_v40 }
 0x32b   :  { %v748_v59 = vadd.f32 %v744_v3, %v728_v2 }
 0x32c   :  { %753 = vst [vmem:[%s1153_s3] sm:$0xff] %v749_v33  ;;  %v747_v4 = vadd.f32 %v740_v54, %v727_v52 }
 0x32d   :  { %v752_v5 = vmax.f32 %v748_v59, 0.0 }
 0x32e   :  { %v751_v60 = vmax.f32 %v747_v4, 0.0 }
 0x32f   :  { %756 = vst [vmem:[%s1153_s3 + $0x18] sm:$0xff] %v752_v5 }
 0x330   :  { %755 = vst [vmem:[%s1153_s3 + $0x10] sm:$0xff] %v751_v60 }
 0x331   :  { %761 = vsyncpa [#allocation3], 1 }
 0x332   :  { %762 = vsyncpa [#allocation5], 1 }

</bundles_post_ra>
